<compile_context>
chip_gen: v6e
topology: v6e:2x2x1
jax: 0.10.0
libtpu: 0.0.40
codegen_flags: <defaults>
</compile_context>

<pallas_src>
import math
import functools

import jax
import jax.numpy as jnp
from jax.experimental import pallas as pl
from jax.experimental.pallas import tpu as pltpu


# ----------------------------------------------------------------------------
# Tiling / VMEM helpers
# ----------------------------------------------------------------------------
def _sublane_align(dtype):
    """Row-tile alignment that respects sublane packing: 8 rows for 4-byte
    dtypes, 16 for bf16, 32 for int8."""
    return max(8, 32 // max(jnp.dtype(dtype).itemsize, 1))


def _pick_tile(dim, target, align):
    """Largest tile <= target that is a multiple of `align` and divides `dim`,
    falling back to the full extent (a single block is always legal)."""
    if dim <= target:
        return dim
    t = (target // align) * align
    while t >= align:
        if dim % t == 0:
            return t
        t -= align
    # TODO(synk): masked edge tiles instead of one giant un-pipelined block.
    return dim


@functools.lru_cache(maxsize=None)
def _vmem_limit_bytes():
    """Leave headroom for compiler scratch: ~40 MiB on 64-MiB-VMEM chips
    (v7x), 64 MiB on 128-MiB chips (v5e/v6e)."""
    try:
        cap = getattr(pltpu.get_tpu_info(), "vmem_capacity_bytes", None)
        if cap:
            return 40 * 2**20 if cap <= 64 * 2**20 else 64 * 2**20
    except Exception:
        pass
    return 40 * 2**20  # conservative: safe on every generation


# ----------------------------------------------------------------------------
# Kernel 1: stacked dense layers  y[s] = x @ W[s]^T + b[s]
# grid = (n_stack, M//tm, N//tn, K//tk); f32 VMEM accumulator resident over K.
# Output (n_stack, M, N): one lane-dense slab per projection, consumed by the
# attention kernel without any wrapper-side slicing.
# ----------------------------------------------------------------------------
def _stacked_linear_kernel(x_ref, w_ref, b_ref, o_ref, acc_ref):
    @pl.when(pl.program_id(3) == 0)
    def _():
        acc_ref[...] = jnp.zeros_like(acc_ref)

    # Native dtype into the MXU; accumulate in f32.
    acc_ref[...] += jnp.dot(x_ref[...], w_ref[0],
                            preferred_element_type=jnp.float32)

    @pl.when(pl.program_id(3) == pl.num_programs(3) - 1)
    def _():
        o_ref[0] = (acc_ref[...] + b_ref[0].astype(jnp.float32)
                    ).astype(o_ref.dtype)


def pallas_stacked_linear(x2d, w_t_stack, b_stack):
    """x2d: (M, K); w_t_stack: (n, K, N) pre-transposed; b_stack: (n, 1, N)
    -> (n, M, N)."""
    M, K = x2d.shape
    n, _, N = w_t_stack.shape
    tm = _pick_tile(M, 512, _sublane_align(x2d.dtype))
    tn = _pick_tile(N, 512, 128)
    tk = _pick_tile(K, 1024, 128)
    assert M % tm == 0 and N % tn == 0 and K % tk == 0
    grid = (n, M // tm, N // tn, K // tk)

    return pl.pallas_call(
        _stacked_linear_kernel,
        out_shape=jax.ShapeDtypeStruct((n, M, N), x2d.dtype),
        grid=grid,
        in_specs=[
            pl.BlockSpec((tm, tk), lambda s, i, j, k: (i, k)),
            pl.BlockSpec((1, tk, tn), lambda s, i, j, k: (s, k, j)),
            pl.BlockSpec((1, 1, tn), lambda s, i, j, k: (s, 0, j)),
        ],
        out_specs=pl.BlockSpec((1, tm, tn), lambda s, i, j, k: (s, i, j)),
        scratch_shapes=[pltpu.VMEM((tm, tn), jnp.float32)],
        compiler_params=pltpu.CompilerParams(
            dimension_semantics=("parallel", "parallel", "parallel",
                                 "arbitrary"),
            vmem_limit_bytes=_vmem_limit_bytes()),
    )(x2d, w_t_stack, b_stack)


# ----------------------------------------------------------------------------
# Kernel 2: flash-blocked multi-head attention.
# grid = (B, Sq//tq, Skv//tkv); KV axis innermost + "arbitrary".
# q/k/v blocks are lane-dense (tile, d_model) slabs (all heads lane-packed);
# online-softmax statistics live in VMEM scratch, replicated across each
# head's d_k lane slice so the finalize is a single lane-dense store.
# p_attn is never materialized to HBM.
# ----------------------------------------------------------------------------
def _flash_mha_kernel(q_ref, k_ref, v_ref, o_ref, acc_ref, m_ref, l_ref,
                      *, n_heads, d_k):
    kv = pl.program_id(2)

    @pl.when(kv == 0)
    def _():
        m_ref[...] = jnp.full_like(m_ref, -jnp.inf)
        l_ref[...] = jnp.zeros_like(l_ref)
        acc_ref[...] = jnp.zeros_like(acc_ref)

    q = q_ref[0, 0]          # (tq, D)   -- 1/sqrt(d_k) folded into W_q already
    k = k_ref[0, 0]          # (tkv, D)
    v = v_ref[0, 0]          # (tkv, D)
    tq = q.shape[0]

    # TODO(synk): head-packed PV matmul (N >= 256) for v6e/v7x when d_k < 128.
    for h in range(n_heads):                       # static unroll over heads
        sl = slice(h * d_k, (h + 1) * d_k)
        qh, kh, vh = q[:, sl], k[:, sl], v[:, sl]  # lane slices, (tile, d_k)

        # scores = q_h @ k_h^T  (contraction on d_k, no transpose op)
        s = jax.lax.dot_general(qh, kh, (((1,), (1,)), ((), ())),
                                preferred_element_type=jnp.float32)  # (tq,tkv)

        m_prev = jnp.max(m_ref[:, sl], axis=-1, keepdims=True)       # (tq, 1)
        l_prev = jnp.max(l_ref[:, sl], axis=-1, keepdims=True)       # (tq, 1)
        m_new = jnp.maximum(m_prev, jnp.max(s, axis=-1, keepdims=True))
        alpha = jnp.exp(m_prev - m_new)                               # (tq, 1)
        p = jnp.exp(s - m_new)                                        # (tq,tkv)
        l_new = alpha * l_prev + jnp.sum(p, axis=-1, keepdims=True)

        # Un-normalized P@V; the softmax denominator is applied once at the end
        # (tq*d_k multiplies instead of tq*tkv per block).
        pv = jnp.dot(p.astype(vh.dtype), vh,
                     preferred_element_type=jnp.float32)              # (tq,d_k)
        acc_ref[:, sl] = alpha * acc_ref[:, sl] + pv
        m_ref[:, sl] = jnp.broadcast_to(m_new, (tq, d_k))
        l_ref[:, sl] = jnp.broadcast_to(l_new, (tq, d_k))

    @pl.when(kv == pl.num_programs(2) - 1)
    def _():
        # One lane-dense (tq, d_model) store; EUP reciprocal for the denom.
        o_ref[0] = (acc_ref[...] * pl.reciprocal(l_ref[...], approx=True)
                    ).astype(o_ref.dtype)


def pallas_flash_attention(q_src, q_sel, k_src, k_sel, v_src, v_sel, *, n_heads):
    """q/k/v sources are (n_proj, B, S, d_model) projection slabs (possibly the
    same array); *_sel picks the projection along the leading axis inside the
    BlockSpec index_map (no wrapper slicing).  Returns (B, Sq, d_model)."""
    _, B, Sq, D = q_src.shape
    Skv = k_src.shape[2]
    d_k = D // n_heads
    align = _sublane_align(q_src.dtype)
    tq = _pick_tile(Sq, 256, align)
    tkv = _pick_tile(Skv, 512, align)
    assert Sq % tq == 0 and Skv % tkv == 0

    # Keep >= 2 parallel grid steps so dual-TensorCore chips don't idle a core.
    while (B * (Sq // tq) < 2 and tq > align
           and (tq // 2) % align == 0 and Sq % (tq // 2) == 0):
        tq //= 2

    grid = (B, Sq // tq, Skv // tkv)
    kernel = functools.partial(_flash_mha_kernel, n_heads=n_heads, d_k=d_k)

    return pl.pallas_call(
        kernel,
        out_shape=jax.ShapeDtypeStruct((B, Sq, D), q_src.dtype),
        grid=grid,
        in_specs=[
            pl.BlockSpec((1, 1, tq, D), lambda b, i, j, s=q_sel: (s, b, i, 0)),
            pl.BlockSpec((1, 1, tkv, D), lambda b, i, j, s=k_sel: (s, b, j, 0)),
            pl.BlockSpec((1, 1, tkv, D), lambda b, i, j, s=v_sel: (s, b, j, 0)),
        ],
        out_specs=pl.BlockSpec((1, tq, D), lambda b, i, j: (b, i, 0)),
        scratch_shapes=[pltpu.VMEM((tq, D), jnp.float32),   # acc
                        pltpu.VMEM((tq, D), jnp.float32),   # m (running max)
                        pltpu.VMEM((tq, D), jnp.float32)],  # l (running denom)
        compiler_params=pltpu.CompilerParams(
            dimension_semantics=("parallel", "parallel", "arbitrary"),
            vmem_limit_bytes=_vmem_limit_bytes()),
    )(q_src, k_src, v_src)


# ----------------------------------------------------------------------------
# Module: MultiHeadedAttention (eval-mode forward, mask=None)
# ----------------------------------------------------------------------------
class MultiHeadedAttentionPallas:
    def __init__(self, h, d_model, key, dropout=0.1):
        assert d_model % h == 0
        self.h = h
        self.d_k = d_model // h
        self.d_model = d_model
        self.p_dropout = dropout   # eval-mode identity
        self.attn = None           # p_attn never materialized (perf)

        # 4 Linear(d_model, d_model) layers, torch-style init (+-1/sqrt(fan_in)).
        bound = 1.0 / math.sqrt(d_model)
        keys = jax.random.split(key, 8)
        self.weights = [jax.random.uniform(keys[2 * i], (d_model, d_model),
                                           jnp.float32, -bound, bound)
                        for i in range(4)]
        self.biases = [jax.random.uniform(keys[2 * i + 1], (d_model,),
                                          jnp.float32, -bound, bound)
                       for i in range(4)]

        # Pre-transposed, stacked parameters (y = x @ W^T + b).  The attention
        # scale 1/sqrt(d_k) is folded into the Q projection at init (free).
        scale = 1.0 / math.sqrt(self.d_k)
        w_t = [jnp.transpose(w) for w in self.weights]
        b2d = [b.reshape(1, d_model) for b in self.biases]
        w_t[0] = w_t[0] * scale
        b2d[0] = b2d[0] * scale

        self.w_qkv_t = jnp.stack(w_t[:3])      # (3, D, D)  [Q K V]
        self.b_qkv = jnp.stack(b2d[:3])        # (3, 1, D)
        self.w_q_t, self.b_q = self.w_qkv_t[0:1], self.b_qkv[0:1]
        self.w_k_t, self.b_k = self.w_qkv_t[1:2], self.b_qkv[1:2]
        self.w_v_t, self.b_v = self.w_qkv_t[2:3], self.b_qkv[2:3]
        self.w_kv_t, self.b_kv = self.w_qkv_t[1:3], self.b_qkv[1:3]
        self.w_o_t = jnp.stack(w_t[3:4])       # (1, D, D)
        self.b_o = jnp.stack(b2d[3:4])         # (1, 1, D)

    def __call__(self, query, key, value):
        B, Sq, D = query.shape
        Skv = key.shape[1]
        h = self.h

        if (query is key) and (key is value):
            # Self-attention fast path: one fused QKV matmul; the (3, B*S, D)
            # output feeds the attention kernel directly (no HBM re-slicing).
            qkv = pallas_stacked_linear(query.reshape(B * Sq, D),
                                        self.w_qkv_t, self.b_qkv)
            qkv = qkv.reshape(3, B, Sq, D)
            x = pallas_flash_attention(qkv, 0, qkv, 1, qkv, 2, n_heads=h)
        elif key is value:
            # Shared K/V source: fuse the K and V projections.
            q3 = pallas_stacked_linear(query.reshape(B * Sq, D),
                                       self.w_q_t, self.b_q
                                       ).reshape(1, B, Sq, D)
            kv = pallas_stacked_linear(key.reshape(B * Skv, D),
                                       self.w_kv_t, self.b_kv
                                       ).reshape(2, B, Skv, D)
            x = pallas_flash_attention(q3, 0, kv, 0, kv, 1, n_heads=h)
        else:
            q3 = pallas_stacked_linear(query.reshape(B * Sq, D),
                                       self.w_q_t, self.b_q
                                       ).reshape(1, B, Sq, D)
            k3 = pallas_stacked_linear(key.reshape(B * Skv, D),
                                       self.w_k_t, self.b_k
                                       ).reshape(1, B, Skv, D)
            v3 = pallas_stacked_linear(value.reshape(B * Skv, D),
                                       self.w_v_t, self.b_v
                                       ).reshape(1, B, Skv, D)
            x = pallas_flash_attention(q3, 0, k3, 0, v3, 0, n_heads=h)

        # x is already lane-dense (B, Sq, d_model) -> this reshape is free.
        out = pallas_stacked_linear(x.reshape(B * Sq, D), self.w_o_t, self.b_o)
        return out.reshape(B, Sq, self.d_model)


# ----------------------------------------------------------------------------
# Pure-JAX reference for the correctness check
# ----------------------------------------------------------------------------
def reference_mha(mha, query, key, value):
    B, Sq, _ = query.shape

    def lin(x, w, b):
        return x @ w.T + b

    def heads(x):
        return jnp.transpose(x.reshape(B, -1, mha.h, mha.d_k), (0, 2, 1, 3))

    q = heads(lin(query, mha.weights[0], mha.biases[0]))
    k = heads(lin(key, mha.weights[1], mha.biases[1]))
    v = heads(lin(value, mha.weights[2], mha.biases[2]))
    scores = jnp.einsum("bhqd,bhkd->bhqk", q, k) / math.sqrt(mha.d_k)
    p = jax.nn.softmax(scores, axis=-1)
    x = jnp.einsum("bhqk,bhkd->bhqd", p, v)
    x = jnp.transpose(x, (0, 2, 1, 3)).reshape(B, Sq, mha.d_model)
    return lin(x, mha.weights[3], mha.biases[3])


if __name__ == "__main__":
    B, S, d_model, h = 2, 8, 32, 4

    root = jax.random.PRNGKey(0)
    k_param, k_x, k_key, k_val = jax.random.split(root, 4)

    mha = MultiHeadedAttentionPallas(h, d_model, k_param)

    # 1) Self-attention (query is key is value) -> fused-QKV path.
    x_in = jax.random.normal(k_x, (B, S, d_model), jnp.float32)
    out_self = jax.block_until_ready(mha(x_in, x_in, x_in))
    ref_self = reference_mha(mha, x_in, x_in, x_in)
    assert out_self.shape == (B, S, d_model)
    assert jnp.allclose(out_self, ref_self, rtol=5e-3, atol=5e-3), \
        "self-attention mismatch vs reference"

    # 2) Cross-attention with shared K/V source (key is value) -> fused-KV path.
    key_in = jax.random.normal(k_key, (B, S, d_model), jnp.float32)
    out_kv = jax.block_until_ready(mha(x_in, key_in, key_in))
    ref_kv = reference_mha(mha, x_in, key_in, key_in)
    assert jnp.allclose(out_kv, ref_kv, rtol=5e-3, atol=5e-3), \
        "shared-KV cross-attention mismatch vs reference"

    # 3) Fully distinct q/k/v -> per-projection path.
    val_in = jax.random.normal(k_val, (B, S, d_model), jnp.float32)
    out_cross = jax.block_until_ready(mha(x_in, key_in, val_in))
    ref_cross = reference_mha(mha, x_in, key_in, val_in)
    assert jnp.allclose(out_cross, ref_cross, rtol=5e-3, atol=5e-3), \
        "cross-attention mismatch vs reference"

    print("KERNEL_OK")
</pallas_src>

<mosaic_0001>
module attributes {stable_mosaic.version = 11 : i64} {
  func.func @_stacked_linear_kernel(%arg0: i32, %arg1: i32, %arg2: i32, %arg3: i32, %arg4: memref<16x32xf32, #tpu.memory_space<vmem>>, %arg5: memref<1x32x32xf32, #tpu.memory_space<vmem>>, %arg6: memref<1x1x32xf32, #tpu.memory_space<vmem>>, %arg7: memref<1x16x32xf32, #tpu.memory_space<vmem>>, %arg8: memref<16x32xf32, #tpu.memory_space<vmem>>) attributes {dimension_semantics = [#tpu.dimension_semantics<parallel>, #tpu.dimension_semantics<parallel>, #tpu.dimension_semantics<parallel>, #tpu.dimension_semantics<arbitrary>], iteration_bounds = array<i64: 3, 1, 1, 1>, scalar_prefetch = 0 : i64, scratch_operands = 1 : i64, tpu.core_type = #tpu.core_type<tc>, window_params = [{transform_indices = @transform_0, window_bounds = array<i64: 16, 32>}, {transform_indices = @transform_1, window_bounds = array<i64: 1, 32, 32>}, {transform_indices = @transform_2, window_bounds = array<i64: 1, 1, 32>}, {transform_indices = @transform_3, window_bounds = array<i64: 1, 16, 32>}]} {
    %c0_i32 = arith.constant 0 : i32
    %0 = arith.cmpi eq, %arg3, %c0_i32 : i32
    %1 = arith.extui %0 : i1 to i32
    %c0_i32_0 = arith.constant 0 : i32
    %2 = arith.cmpi ne, %1, %c0_i32_0 : i32
    scf.if %2 {
      %cst_11 = arith.constant 0.000000e+00 : f32
      %13 = vector.broadcast %cst_11 : f32 to vector<16x32xf32>
      %c0_12 = arith.constant 0 : index
      %c0_13 = arith.constant 0 : index
      %14 = vector.load %arg8[%c0_12, %c0_13] : memref<16x32xf32, #tpu.memory_space<vmem>>, vector<16x32xf32>
      tpu.vector_store %arg8[%c0_12, %c0_13], %13 {strides = array<i32>} : memref<16x32xf32, #tpu.memory_space<vmem>>, vector<16x32xf32>,
    } else {
    }
    %c0 = arith.constant 0 : index
    %c0_1 = arith.constant 0 : index
    %3 = vector.load %arg8[%c0, %c0_1] : memref<16x32xf32, #tpu.memory_space<vmem>>, vector<16x32xf32>
    %c0_2 = arith.constant 0 : index
    %c0_3 = arith.constant 0 : index
    %4 = vector.load %arg4[%c0_2, %c0_3] : memref<16x32xf32, #tpu.memory_space<vmem>>, vector<16x32xf32>
    %c0_4 = arith.constant 0 : index
    %c0_5 = arith.constant 0 : index
    %c0_6 = arith.constant 0 : index
    %5 = vector.load %arg5[%c0_4, %c0_5, %c0_6] : memref<1x32x32xf32, #tpu.memory_space<vmem>>, vector<1x32x32xf32>
    %6 = vector.shape_cast %5 : vector<1x32x32xf32> to vector<32x32xf32>
    %cst = arith.constant dense<0.000000e+00> : vector<16x32xf32>
    %7 = tpu.matmul %4, %6, %cst {dimension_numbers = #tpu.dot_dimension_numbers<[1], [0], [0], [1], [0, 0, 1, 1], [], []>} : vector<16x32xf32>, vector<32x32xf32>, vector<16x32xf32> -> vector<16x32xf32>
    %8 = arith.addf %3, %7 : vector<16x32xf32>
    %c0_7 = arith.constant 0 : index
    %c0_8 = arith.constant 0 : index
    %9 = vector.load %arg8[%c0_7, %c0_8] : memref<16x32xf32, #tpu.memory_space<vmem>>, vector<16x32xf32>
    tpu.vector_store %arg8[%c0_7, %c0_8], %8 {strides = array<i32>} : memref<16x32xf32, #tpu.memory_space<vmem>>, vector<16x32xf32>,
    %c0_i32_9 = arith.constant 0 : i32
    %10 = arith.cmpi eq, %arg3, %c0_i32_9 : i32
    %11 = arith.extui %10 : i1 to i32
    %c0_i32_10 = arith.constant 0 : i32
    %12 = arith.cmpi ne, %11, %c0_i32_10 : i32
    scf.if %12 {
      %c0_11 = arith.constant 0 : index
      %c0_12 = arith.constant 0 : index
      %13 = vector.load %arg8[%c0_11, %c0_12] : memref<16x32xf32, #tpu.memory_space<vmem>>, vector<16x32xf32>
      %c0_13 = arith.constant 0 : index
      %c0_14 = arith.constant 0 : index
      %c0_15 = arith.constant 0 : index
      %14 = vector.load %arg6[%c0_13, %c0_14, %c0_15] : memref<1x1x32xf32, #tpu.memory_space<vmem>>, vector<1x1x32xf32>
      %15 = vector.shape_cast %14 : vector<1x1x32xf32> to vector<1x32xf32>
      %16 = vector.broadcast %15 : vector<1x32xf32> to vector<16x32xf32>
      %17 = arith.addf %13, %16 : vector<16x32xf32>
      %c0_16 = arith.constant 0 : index
      %c0_17 = arith.constant 0 : index
      %c0_18 = arith.constant 0 : index
      %18 = vector.load %arg7[%c0_16, %c0_17, %c0_18] : memref<1x16x32xf32, #tpu.memory_space<vmem>>, vector<1x16x32xf32>
      %19 = vector.shape_cast %18 : vector<1x16x32xf32> to vector<16x32xf32>
      %20 = vector.shape_cast %17 : vector<16x32xf32> to vector<1x16x32xf32>
      tpu.vector_store %arg7[%c0_16, %c0_17, %c0_18], %20 {strides = array<i32>} : memref<1x16x32xf32, #tpu.memory_space<vmem>>, vector<1x16x32xf32>,
    } else {
    }
    return
  }
  func.func @transform_0(%arg0: i32, %arg1: i32, %arg2: i32, %arg3: i32) -> (i32, i32) {
    %c0_i32 = arith.constant 0 : i32
    return %arg1, %arg3 : i32, i32
  }
  func.func @transform_1(%arg0: i32, %arg1: i32, %arg2: i32, %arg3: i32) -> (i32, i32, i32) {
    %c0_i32 = arith.constant 0 : i32
    return %arg0, %arg3, %arg2 : i32, i32, i32
  }
  func.func @transform_2(%arg0: i32, %arg1: i32, %arg2: i32, %arg3: i32) -> (i32, i32, i32) {
    %c0_i32 = arith.constant 0 : i32
    %c0_i32_0 = arith.constant 0 : i32
    return %arg0, %c0_i32, %arg2 : i32, i32, i32
  }
  func.func @transform_3(%arg0: i32, %arg1: i32, %arg2: i32, %arg3: i32) -> (i32, i32, i32) {
    %c0_i32 = arith.constant 0 : i32
    return %arg0, %arg1, %arg2 : i32, i32, i32
  }
}

</mosaic_0001>

<bundles_post_ra>
// kernel: tpu_custom_call.1
= control target key start
LH: loop header
LB: loop body
LE: loop exit
PB: predicated region body
PF: predicated region fallthrough
CT: control target
= control target key end

     0   :  { %8 = vsyncpa [#allocation4], 0  ;;  %s1021_s0 = inlined_call_operand.hbm [shape: f32[16,32], index: 0, kind: input, shape index: {}]   ;;  %s1022_s1 = inlined_call_operand.hbm [shape: f32[3,32,32], index: 1, kind: input, shape index: {}]   ;;  %s1023_s2 = inlined_call_operand.vmem [shape: f32[3,1,32], index: 2, kind: input, shape index: {}]   ;;  %s1024_s3 = inlined_call_operand.hbm [shape: f32[3,16,32], index: 3, kind: output, shape index: {}]  }
   0x1   :  { %9 = vsyncpa [#allocation7], 0 }
   0x2   :  { %11 = vsyncpa [#allocation7 + $0x1], 0 }
   0x3   :  { %12 = vsyncpa [#allocation5], 0 }
   0x4   :  { %14 = vsyncpa [#allocation5 + $0x1], 0  ;;  %s822_s12 = smov 0   ;;  %s824_s13 = smov 0  }
   0x5   :  { %s826_s14 = smov 0   ;;  %s828_s15 = smov 0  }
   0x6   :  { %s830_s16 = smov 0   ;;  %s832_s17 = smov 0  }
   0x7 LB: > { %s537_s18 = sadd.s32 4294967295, %s792_s17   ;;  %s538_s19 = sadd.s32 4294967294, %s792_s17   ;;  %s792_s17 = sphi %s832_s17, %s20_s17   ;;  %s788_s16 = sphi %s830_s16, %s1045_s16   ;;  %s784_s15 = sphi %s828_s15, %s1044_s15   ;;  %s780_s14 = sphi %s826_s14, %s1043_s14   ;;  %s776_s13 = sphi %s824_s13, %s1042_s13   ;;  %s772_s12 = sphi %s822_s12, %s1041_s12  }
   0x8   : > { %p98_p0 = scmp.ne.s32.totalorder %s776_s13, %s772_s12  ;;  %p856_p1 = scmp.eq.s32.totalorder %s537_s18, 0 }
   0x9   : > { %p860_p2 = scmp.eq.s32.totalorder %s537_s18, 2  ;;  %p160_p3 = scmp.eq.s32.totalorder %s538_s19, 2 }
   0xa   : > { %p866_p4 = por %p856_p1, %p98_p0  ;;  %p539_p5 = scmp.ge.s32.totalorder %s792_s17, 1 }
   0xb   : > { %p871_p6 = por %p160_p3, %p98_p0  ;;  %p167_p7 = scmp.lt.s32.totalorder %s792_s17, 4 }
   0xc   : > { %s794_s25 = smov [#allocation3]   ;;  %s46_s28 = sadd.s32 1, %s788_s16 }
   0xd   : > { %s1031_s23 = scalar_select %p871_p6, 1, 0 }
   0xe   : > { %p876_p8 = pnand %p539_p5, %p167_p7  ;;  %s183_s26 = sshll.u32 %s794_s25, 4  ;;  %s184_s26 = int_to_ptr.vmem [resolvable:$true] %s183_s26 }
   0xf   : > { %s665_s29 = scalar_lea.vmem %s184_s26, 256  ;;  %p673_p3 = scmp.lt.s32.totalorder %s184_s26, %s184_s26 }
  0x10   : > { %p584_p9 = pneg %p876_p8  ;;  %p666_p12 = scmp.ne.s32.totalorder %s184_s26, %s665_s29 }
  0x11   : > { %p674_p5 = scmp.lt.s32.totalorder %s665_s29, %s665_s29 }
  0x12   : > { %p884_p10 = pnand %p584_p9, %p856_p1 }
  0x13   : > { %p675_p7 = por %p674_p5, %p673_p3 }
  0x14   : > { %p656_p11 = pneg %p884_p10 }
  0x16   : > { %p668_p13 = pnand %p666_p12, %p656_p11 }
  0x18   : > { %p669_p0 = pneg %p668_p13 }
  0x1a   : > { %p676_p6 = pnand %p675_p7, %p669_p0 }
  0x1c   : > { %679 = shalt.err (!%p676_p6)
}
  0x1d   : > { %s1025_s30 = smov 128   ;;  %s1026_s4 = smov 8  }
  0x1e   : > { %587 = dma.hbm_to_vmem [thread:$0]  (!%p884_p10), %s1021_s0, 256, %s184_s26, [#allocation4], %s1025_s30, %s1025_s30, %s1026_s4  }
  0x1f   : > { %p48_p6 = scmp.ge.s32.totalorder %s46_s28, 3  ;;  %s85_s7 = sadd.s32 1, %s780_s14 }
  0x20   : > { %p92_p9 = scmp.ne.s32.totalorder %s780_s14, %s776_s13  ;;  %p93_p11 = scmp.eq.s32.totalorder %s792_s17, 0 }
  0x21   : > { %s1047_s28 = smov (%p48_p6, %s46_s28), 0  ;;  %p597_p0 = scmp.lt.s32.totalorder %s792_s17, 3 }
  0x22   : > { %p905_p12 = por %p93_p11, %p92_p9  ;;  %p911_p13 = por %p860_p2, %p92_p9 }
  0x23   : > { %s78_s10 = ssub.s32 %s788_s16, %s1047_s28  ;;  %s197_s11 = sand.u32 1, %s780_s14  }
  0x24   : > { %s1035_s9 = scalar_select %p911_p13, 1, 0 }
  0x25   : > { %p83_p10 = scmp.eq.s32.totalorder %s78_s10, 0  ;;  %s542_s18 = sshll.u32 %s197_s11, 5 }
  0x26   : > { %s557_s25 = sshll.u32 %s788_s16, 9  ;;  %s201_s5 = scalar_lea.vmem [#allocation6], %s542_s18 }
  0x27   : > { %s920_s19 = scalar_select %p83_p10, %s780_s14, %s85_s7  }
  0x28   : > { %s210_s29 = scalar_lea.hbm %s1022_s1, %s557_s25  ;;  %s211_s6 = sshll.u32 %s201_s5, 4  ;;  %s212_s6 = int_to_ptr.vmem [resolvable:$true] %s211_s6 }
  0x29   : > { %p928_p2 = pnand %p597_p0, %p905_p12  ;;  %s198_s30 = scalar_lea.sflag [#allocation7], %s197_s11 }
  0x2a   : > { %s693_s10 = scalar_lea.vmem %s212_s6, 512  ;;  %s797_s7 = smov [#allocation6]  }
  0x2b   : > { %p682_p3 = pneg %p928_p2  ;;  %p694_p5 = scmp.ne.s32.totalorder %s212_s6, %s693_s10 }
  0x2c   : > { %s698_s4 = sshll.u32 %s797_s7, 4  ;;  %s699_s4 = int_to_ptr.vmem [resolvable:$false] %s698_s4 }
  0x2d   : > { %p696_p7 = pnand %p694_p5, %p682_p3  ;;  %s700_s25 = scalar_lea.vmem %s699_s4, 1024 }
  0x2e   : > { %p701_p9 = scmp.lt.s32.totalorder %s212_s6, %s699_s4  ;;  %p702_p11 = scmp.lt.s32.totalorder %s700_s25, %s693_s10 }
  0x2f   : > { %p697_p6 = pneg %p696_p7 }
  0x30   : > { %p703_p10 = por %p702_p11, %p701_p9 }
  0x32   : > { %p704_p13 = pnand %p703_p10, %p697_p6 }
  0x34   : > { %707 = shalt.err (!%p704_p13)
}
  0x35   : > { %s1037_s8 = smov 8   ;;  %s1038_s18 = smov 128  }
  0x36   : > { %591 = dma.hbm_to_vmem [thread:$0]  (!%p928_p2), %s210_s29, 512, %s212_s6, %s198_s30, %s1038_s18, %s1038_s18, %s1037_s8  }
  0x37   : > { %232 = sbr.rel (%p876_p8) target bundleno = 295 (0x127), region = 32 }
  0x3c   : > { %759 = dma.done.wait (%p856_p1), [#allocation4], 256  }
  0x3d   : > { %761 = vsyncadd (%p856_p1), [#allocation4], 4294967040  ;;  %s946_s4 = sand.u32 1, %s776_s13  }
  0x3e   : > { %s547_s11 = sshll.u32 %s946_s4, 5  ;;  %s239_s26 = scalar_lea.sflag [#allocation7], %s946_s4 }
  0x3f   : > { %s242_s27 = scalar_lea.vmem [#allocation6], %s547_s11 }
  0x40   : > { %763 = dma.done.wait (%p866_p4), %s239_s26, 512  }
  0x41   : > { %765 = vsyncadd (%p866_p4), %s239_s26, 4294966784  ;;  %vm284_vm0 = vcmask 261120   ;;  %v798_v0 = vmov 0.0   ;;  %v294_v1 = vld [vmem:[%s242_s27 + $0x18] sm:$0xff]  ;;  %v293_v2 = vld [vmem:[%s242_s27 + $0x10] sm:$0xff]  ;;  %p273_p1 = scmp.lt.s32.totalorder %s784_s15, 2 }
  0x42   : > { %286 = vst.msk [vmem:[#allocation2 + $0x8] sm:$0xff] %vm284_vm0, %v798_v0  ;;  %285 = vst.msk [vmem:[#allocation2] sm:$0xff] %vm284_vm0, %v798_v0  ;;  %565 = vmatprep.subr.mxu0 %v294_v1  ;;  %v289_v3 = vld [vmem:[#allocation3] sm:$0xff]  ;;  %v292_v4 = vld [vmem:[%s242_s27 + $0x8] sm:$0xff]  ;;  %s548_s22 = sshll.u32 %s946_s4, 4  ;;  %s558_s5 = sshll.u32 %s784_s15, 8 }
  0x43   : > { %566 = vmatpush3.msra.mxu0 %v294_v1  ;;  %573 = vmatprep.mubr.msk.f32.mxu0 %vm284_vm0, %v289_v3  ;;  %v291_v5 = vld [vmem:[%s242_s27] sm:$0xff]  ;;  %v290_v6 = vld [vmem:[#allocation3 + $0x8] sm:$0xff]  ;;  %s274_s20 = scalar_select %p273_p1, %s784_s15, 2 }
  0x44   : > { %567 = vmatprep.subr.mxu0 %v293_v2  ;;  %s270_s6 = scalar_lea.vmem [#allocation8], %s548_s22  ;;  %s970_s25 = scalar_lea.hbm %s1024_s3, %s558_s5 }
  0x45   : > { %568 = vmatpush3.msra.mxu0 %v293_v2  ;;  %s278_s29 = scalar_lea.vmem %s1023_s2, %s274_s20  ;;  %s414_s21 = sshll.u32 %s270_s6, 4  ;;  %s972_s21 = int_to_ptr.vmem [resolvable:$true] %s414_s21 }
  0x46   : > { %569 = vmatprep.subr.mxu0 %v292_v4  ;;  %v551_v13 = vld [vmem:[%s278_s29] ss:$0 sm:$0xff]  ;;  %s398_s15 = scalar_lea.sflag [#allocation5], %s946_s4  ;;  %s708_s8 = scalar_lea.vmem %s972_s21, 256 }
  0x47   : > { %570 = vmatpush3.msra.mxu0 %v292_v4  ;;  %p709_p4 = scmp.ne.s32.totalorder %s972_s21, %s708_s8  ;;  %p1039_p8 = scmp.ne.s32.totalorder %s1035_s9, 0 }
  0x48   : > { %571 = vmatprep.subr.mxu0 %v291_v5  ;;  %s799_s18 = smov [#allocation8]  }
  0x49   : > { %572 = vmatpush3.msra.mxu0 %v291_v5  ;;  %v288_v7 = vld [vmem:[#allocation2 + $0x8] sm:$0xff]  ;;  %v287_v9 = vld [vmem:[#allocation2] sm:$0xff]  ;;  %p710_p12 = pnand %p709_p4, %p1039_p8  ;;  %s712_s11 = sshll.u32 %s799_s18, 4  ;;  %s713_s11 = int_to_ptr.vmem [resolvable:$false] %s712_s11 }
  0x4a   : > { %574 = vmatmul.mubr.msk.f32.vlgmr.msra.gmra.mxu0 %vm284_vm0, %v290_v6  ;;  %s714_s26 = scalar_lea.vmem %s713_s11, 512  ;;  %p715_p0 = scmp.lt.s32.totalorder %s972_s21, %s713_s11 }
  0x4b   : > { %p711_p13 = pneg %p710_p12  ;;  %p716_p2 = scmp.lt.s32.totalorder %s714_s26, %s708_s8 }
  0x4d   : > { %p717_p3 = por %p716_p2, %p715_p0 }
  0x4f   : > { %p718_p5 = pnand %p717_p3, %p711_p13 }
 0x10a   : > { %v575_v8 = vpop.f32.mrf.mxu0 }
 0x10b   : > { %v378_v10 = vadd.f32 %v575_v8, %v288_v7 }
 0x10c   : > { %v368_v11 = vpop.f32.mrf.mxu0 }
 0x10d   : > { %380 = vst.msk [vmem:[#allocation2 + $0x8] sm:$0xff] %vm284_vm0, %v378_v10  ;;  %v377_v12 = vadd.f32 %v368_v11, %v287_v9 }
 0x10f   : > { %379 = vst.msk [vmem:[#allocation2] sm:$0xff] %vm284_vm0, %v377_v12 }
 0x114   : > { %v385_v14 = vld [vmem:[#allocation2 + $0x8] sm:$0xff] }
 0x115   : > { %v394_v15 = vadd.f32 %v551_v13, %v385_v14 }
 0x116   : > { %v384_v16 = vld [vmem:[#allocation2] sm:$0xff] }
 0x117   : > { %v393_v17 = vadd.f32 %v551_v13, %v384_v16  ;;  %396 = vst.msk [vmem:[%s270_s6 + $0x8] sm:$0xff] %vm284_vm0, %v394_v15 }
 0x119   : > { %395 = vst.msk [vmem:[%s270_s6] sm:$0xff] %vm284_vm0, %v393_v17 }
 0x11a   : > { %721 = shalt.err (!%p718_p5)
}
 0x11b   : > { %s722_s27 = scalar_lea.hbm %s970_s25, 256  ;;  %s726_s24 = scalar_lea.hbm %s1024_s3, 768 }
 0x11c   : > { %p723_p7 = scmp.ne.s32.totalorder %s970_s25, %s722_s27  ;;  %p727_p11 = scmp.lt.s32.totalorder %s970_s25, %s1024_s3 }
 0x11d   : > { %p728_p10 = scmp.lt.s32.totalorder %s726_s24, %s722_s27 }
 0x11e   : > { %p724_p6 = pnand %p723_p7, %p1039_p8 }
 0x11f   : > { %p729_p1 = por %p728_p10, %p727_p11 }
 0x120   : > { %p725_p9 = pneg %p724_p6 }
 0x122   : > { %p730_p4 = pnand %p729_p1, %p725_p9 }
 0x124   : > { %733 = shalt.err (!%p730_p4)
}
 0x125   : > { %s800_s5 = smov 128   ;;  %s801_s6 = smov 8  }
 0x126   : > { %582 = dma.vmem_to_hbm [thread:$0]  (%p1039_p8), %s972_s21, 256, %s970_s25, %s398_s15, %s800_s5, %s800_s5, %s801_s6  }
 0x127 PF: > { %p599_p12 = scmp.ge.s32.totalorder %s792_s17, 2  ;;  %s429_s10 = sand.u32 1, %s772_s12  }
 0x128   : > { %p1040_p13 = scmp.ne.s32.totalorder %s1031_s23, 0  ;;  %s430_s7 = scalar_lea.sflag [#allocation5], %s429_s10 }
 0x12a   : > { %p593_p0 = pnand %p599_p12, %p1040_p13 }
 0x12c   : > { %p594_p2 = pneg %p593_p0 }
 0x12e   : > { %767 = dma.done.wait (%p594_p2), %s430_s7, 256  }
 0x12f   : > { %769 = vsyncadd (%p594_p2), %s430_s7, 4294967040  ;;  %s20_s17 = sadd.s32 1, %s792_s17   ;;  %s1041_s12 = smov %s776_s13 }
 0x130   : > { %p17_p3 = scmp.ge.s32.totalorder %s20_s17, 5   ;;  %s1042_s13 = smov %s780_s14 }
 0x131   : > { %s1043_s14 = smov %s920_s19  ;;  %s1044_s15 = smov %s788_s16 }
 0x132   : > { %s1045_s16 = smov %s1047_s28  ;;  %19 = sbr.rel (!%p17_p3) target bundleno = 7 (0x7), region = 94 }
 0x137   :  { %435 = vsyncpa [#allocation4], 1 }
 0x138   :  { %437 = vsyncpa [#allocation4 + $0x1], 1 }
 0x139   :  { %438 = vsyncpa [#allocation7], 1 }
 0x13a   :  { %440 = vsyncpa [#allocation7 + $0x1], 1 }
 0x13b   :  { %441 = vsyncpa [#allocation5], 1 }
 0x13c   :  { %443 = vsyncpa [#allocation5 + $0x1], 1 }

</bundles_post_ra>
